<compile_context>
chip_gen: v5e
topology: v5e:2x2
jax: 0.10.0
libtpu: 0.0.40
codegen_flags: <defaults>
</compile_context>

<pallas_src>
import jax
import jax.numpy as jnp
from jax.experimental import pallas as pl
from jax.experimental.pallas import tpu as pltpu


# Below this batch size XLA's fused x @ W.T + b beats any kernel launch for
# IN=32/OUT=8 (re-sweep per TPU generation).
PALLAS_MIN_BATCH = 2048

# Original-batch rows per grid step (=> 128 packed rows at pack=16).
# Sweepable 1024-4096; VMEM stays ~1 MiB so it is safe on v5e/v6e/v7x alike.
TARGET_TILE_ROWS = 2048

# Keep the resident block-diagonal weight comfortably inside VMEM.
_MAX_PACKED_WEIGHT_BYTES = 4 * 1024 * 1024


def _round_up(x, m):
    return ((x + m - 1) // m) * m


def _choose_pack(input_size, output_size):
    """Batch-rows packed per 128-lane output row (1 => packing disabled)."""
    if output_size >= 128 or 128 % output_size != 0:
        return 1
    pack = 128 // output_size
    if pack * input_size * pack * output_size * 4 > _MAX_PACKED_WEIGHT_BYTES:
        return 1
    return pack


def _packed_linear_kernel(x_ref, w_ref, b_ref, o_ref):
    # x_ref: (TBP, P*IN) streamed; w_ref: (P*IN, P*OUT) resident block-diagonal
    # weight; b_ref: (1, P*OUT) resident; o_ref: (TBP, P*OUT) lane-dense output.
    acc = jnp.dot(x_ref[...], w_ref[...], preferred_element_type=jnp.float32)
    o_ref[...] = (acc + b_ref[...]).astype(o_ref.dtype)


def _tile_and_grid(b_packed, pack, target_tile_rows):
    """Pick (packed rows per tile, #grid steps) for a given packed-row count."""
    target_tbp = max(8, target_tile_rows // pack)
    # Keep >= 2 grid steps whenever there is enough work so both v7x
    # TensorCores get tiles under dimension_semantics=("parallel",).
    n_blocks = max(pl.cdiv(b_packed, target_tbp), 2 if b_packed >= 16 else 1)
    tile_bp = _round_up(pl.cdiv(b_packed, n_blocks), 8)
    n_blocks = pl.cdiv(b_packed, tile_bp)   # last block may be ragged (masked)
    return tile_bp, n_blocks


def packed_linear_pallas(x, w_pack, b_pack, output_size, pack,
                         *, target_tile_rows=TARGET_TILE_ROWS):
    """y = x @ W.T + b via a row-packed, lane-dense Pallas matmul.

    x:      (B, IN) float32
    w_pack: (P*IN, P*OUT) block-diagonal weight, built once from W (OUT, IN)
    b_pack: (1, P*OUT) bias tiled P times
    returns (B, OUT) float32
    """
    B, in_size = x.shape
    k_in = pack * in_size          # packed contraction dim (e.g. 512)
    n_out = pack * output_size     # packed output width   (e.g. 128, lane-dense)

    # Minimal pad: at most pack-1 rows so the packing reshape is valid.  Never
    # padded to the tile size — the last grid block is ragged instead.
    b_pad = _round_up(B, pack)
    if b_pad != B:
        x = jnp.pad(x, ((0, b_pad - B), (0, 0)))
    b_packed = b_pad // pack

    # Zero-copy view: `pack` consecutive batch rows become one packed row.
    x_packed = x.reshape(b_packed, k_in)

    tile_bp, n_blocks = _tile_and_grid(b_packed, pack, target_tile_rows)

    elt = 4  # float32 bytes
    tile_x_bytes = tile_bp * k_in * elt
    tile_o_bytes = tile_bp * n_out * elt
    resident_bytes = (w_pack.size + b_pack.size) * elt
    # Double-buffered x/out streams + one f32 accumulator + resident params,
    # plus headroom: ~3 MiB at the default tile — well inside v7x's 64 MiB.
    vmem_limit = (2 * (tile_x_bytes + tile_o_bytes) + tile_o_bytes
                  + resident_bytes + (2 << 20))

    cost = pl.CostEstimate(
        flops=2 * b_packed * k_in * n_out,       # MXU work actually issued
        transcendentals=0,
        bytes_accessed=elt * (b_packed * k_in + int(w_pack.size)
                              + int(b_pack.size) + b_packed * n_out),
    )

    y_packed = pl.pallas_call(
        _packed_linear_kernel,
        out_shape=jax.ShapeDtypeStruct((b_packed, n_out), x.dtype),
        grid=(n_blocks,),
        in_specs=[
            pl.BlockSpec((tile_bp, k_in), lambda i: (i, 0)),   # x: streams
            pl.BlockSpec((k_in, n_out), lambda i: (0, 0)),     # W_pack: resident
            pl.BlockSpec((1, n_out), lambda i: (0, 0)),        # bias: resident
        ],
        out_specs=pl.BlockSpec((tile_bp, n_out), lambda i: (i, 0)),
        compiler_params=pltpu.CompilerParams(
            dimension_semantics=("parallel",),
            vmem_limit_bytes=int(vmem_limit),
        ),
        cost_estimate=cost,
    )(x_packed, w_pack, b_pack)

    # Zero-copy unpack; the trailing slice only exists when B wasn't a multiple
    # of `pack`, and only touches the small (B, OUT) output.
    y = y_packed.reshape(b_pad, output_size)
    return y if b_pad == B else y[:B]


class LinearRegressionModel:
    """JAX/Pallas port of the PyTorch module: forward(x) = Linear(x)."""

    def __init__(self, input_size, output_size, key):
        self.input_size = input_size
        self.output_size = output_size
        kw, kb = jax.random.split(key)
        bound = 1.0 / (input_size ** 0.5)   # nn.Linear default init range
        self.weight = jax.random.uniform(
            kw, (output_size, input_size), minval=-bound, maxval=bound,
            dtype=jnp.float32)
        self.bias = jax.random.uniform(
            kb, (output_size,), minval=-bound, maxval=bound, dtype=jnp.float32)

        # Pack ONCE at init (parameters are static): block-diagonal weight that
        # maps `pack` consecutive batch rows onto one 128-lane output row.
        self.pack = _choose_pack(input_size, output_size)
        if self.pack > 1:
            eye = jnp.eye(self.pack, dtype=self.weight.dtype)
            self.w_pack = jnp.kron(eye, self.weight.T)             # (P*IN, P*OUT)
            self.b_pack = jnp.tile(self.bias, self.pack)[None, :]  # (1, P*OUT)
        else:
            # TODO(synk): no packed-Pallas path when output_size doesn't divide
            # 128 (or the packed weight would be too large); XLA's fused GEMM
            # handles those configs.
            self.w_pack = None
            self.b_pack = None

    def __call__(self, x):
        B = x.shape[0]
        if self.pack == 1 or B < PALLAS_MIN_BATCH:
            # Tiny batches (or unpackable configs): a fused XLA op beats any
            # kernel launch at these feature dims.
            return x @ self.weight.T + self.bias
        return packed_linear_pallas(
            x, self.w_pack, self.b_pack, self.output_size, self.pack)


if __name__ == "__main__":
    # LinearRegressionModel(input_size=32, output_size=8)
    input_size, output_size = 32, 8

    key = jax.random.PRNGKey(0)
    kx1, kx2, kx3, kparam = jax.random.split(key, 4)

    model = LinearRegressionModel(input_size, output_size, kparam)

    def ref(x):
        return x @ model.weight.T + model.bias

    # 1) Tiny batch -> fused-XLA fast path (no kernel launch).
    x_small = jax.random.normal(kx1, (4, input_size), dtype=jnp.float32)
    y_small = jax.block_until_ready(model(x_small))
    assert y_small.shape == (4, output_size)
    assert jnp.allclose(y_small, ref(x_small), atol=1e-5, rtol=1e-5)

    # 2) Large batch -> packed Pallas path: 2 grid steps of 2048 rows
    #    (128 packed rows each), so both v7x TensorCores get work.
    x_big = jax.random.normal(kx2, (4096, input_size), dtype=jnp.float32)
    y_big = jax.block_until_ready(model(x_big))
    assert y_big.shape == (4096, output_size)
    assert jnp.allclose(y_big, ref(x_big), atol=1e-5, rtol=1e-5)

    # 3) Odd batch, Pallas path called directly: exercises the minimal
    #    pad-to-16 and the ragged (masked) last grid block.
    x_odd = jax.random.normal(kx3, (3000, input_size), dtype=jnp.float32)
    y_odd = jax.block_until_ready(
        packed_linear_pallas(x_odd, model.w_pack, model.b_pack,
                             output_size, model.pack))
    assert y_odd.shape == (3000, output_size)
    assert jnp.allclose(y_odd, ref(x_odd), atol=1e-5, rtol=1e-5)

    print("KERNEL_OK")
</pallas_src>

<mosaic_0001>
module attributes {stable_mosaic.version = 11 : i64} {
  func.func @_packed_linear_kernel(%arg0: i32, %arg1: memref<128x512xf32, #tpu.memory_space<vmem>>, %arg2: memref<512x128xf32, #tpu.memory_space<vmem>>, %arg3: memref<1x128xf32, #tpu.memory_space<vmem>>, %arg4: memref<128x128xf32, #tpu.memory_space<vmem>>) attributes {dimension_semantics = [#tpu.dimension_semantics<parallel>], iteration_bounds = array<i64: 2>, scalar_prefetch = 0 : i64, scratch_operands = 0 : i64, tpu.core_type = #tpu.core_type<tc>, window_params = [{transform_indices = @transform_0, window_bounds = array<i64: 128, 512>}, {pipeline_mode = #tpu.pipeline_mode<synchronous>, transform_indices = @transform_1, window_bounds = array<i64: 512, 128>}, {pipeline_mode = #tpu.pipeline_mode<synchronous>, transform_indices = @transform_2, window_bounds = array<i64: 1, 128>}, {transform_indices = @transform_3, window_bounds = array<i64: 128, 128>}]} {
    %c0 = arith.constant 0 : index
    %c0_0 = arith.constant 0 : index
    %0 = vector.load %arg1[%c0, %c0_0] : memref<128x512xf32, #tpu.memory_space<vmem>>, vector<128x512xf32>
    %c0_1 = arith.constant 0 : index
    %c0_2 = arith.constant 0 : index
    %1 = vector.load %arg2[%c0_1, %c0_2] : memref<512x128xf32, #tpu.memory_space<vmem>>, vector<512x128xf32>
    %cst = arith.constant dense<0.000000e+00> : vector<128x128xf32>
    %2 = tpu.matmul %0, %1, %cst {dimension_numbers = #tpu.dot_dimension_numbers<[1], [0], [0], [1], [0, 0, 1, 1], [], []>} : vector<128x512xf32>, vector<512x128xf32>, vector<128x128xf32> -> vector<128x128xf32>
    %c0_3 = arith.constant 0 : index
    %c0_4 = arith.constant 0 : index
    %3 = vector.load %arg3[%c0_3, %c0_4] : memref<1x128xf32, #tpu.memory_space<vmem>>, vector<1x128xf32>
    %4 = vector.broadcast %3 : vector<1x128xf32> to vector<128x128xf32>
    %5 = arith.addf %2, %4 : vector<128x128xf32>
    %c0_5 = arith.constant 0 : index
    %c0_6 = arith.constant 0 : index
    %6 = vector.load %arg4[%c0_5, %c0_6] : memref<128x128xf32, #tpu.memory_space<vmem>>, vector<128x128xf32>
    tpu.vector_store %arg4[%c0_5, %c0_6], %5 {strides = array<i32>} : memref<128x128xf32, #tpu.memory_space<vmem>>, vector<128x128xf32>,
    return
  }
  func.func @transform_0(%arg0: i32) -> (i32, i32) {
    %c0_i32 = arith.constant 0 : i32
    %c0_i32_0 = arith.constant 0 : i32
    return %arg0, %c0_i32 : i32, i32
  }
  func.func @transform_1(%arg0: i32) -> (i32, i32) {
    %c0_i32 = arith.constant 0 : i32
    %c0_i32_0 = arith.constant 0 : i32
    %c0_i32_1 = arith.constant 0 : i32
    return %c0_i32, %c0_i32_0 : i32, i32
  }
  func.func @transform_2(%arg0: i32) -> (i32, i32) {
    %c0_i32 = arith.constant 0 : i32
    %c0_i32_0 = arith.constant 0 : i32
    %c0_i32_1 = arith.constant 0 : i32
    return %c0_i32, %c0_i32_0 : i32, i32
  }
  func.func @transform_3(%arg0: i32) -> (i32, i32) {
    %c0_i32 = arith.constant 0 : i32
    %c0_i32_0 = arith.constant 0 : i32
    return %arg0, %c0_i32 : i32, i32
  }
}

</mosaic_0001>

<bundles_post_ra>
// kernel: tpu_custom_call.1
= control target key start
LH: loop header
LB: loop body
LE: loop exit
PB: predicated region body
PF: predicated region fallthrough
CT: control target
= control target key end

     0   :  { %8 = vsyncpa [#allocation3], 0  ;;  %s1208_s0 = inlined_call_operand.hbm [shape: f32[256,512], index: 0, kind: input, shape index: {}]   ;;  %s1209_s1 = inlined_call_operand.hbm [shape: f32[512,128], index: 1, kind: input, shape index: {}]   ;;  %s1210_s2 = inlined_call_operand.vmem [shape: f32[1,128], index: 2, kind: input, shape index: {}]   ;;  %s1211_s3 = inlined_call_operand.hbm [shape: f32[256,128], index: 3, kind: output, shape index: {}]  }
   0x1   :  { %10 = vsyncpa [#allocation3 + $0x1], 0 }
   0x2   :  { %11 = vsyncpa [#allocation6], 0 }
   0x3   :  { %12 = vsyncpa [#allocation4], 0 }
   0x4   :  { %14 = vsyncpa [#allocation4 + $0x1], 0  ;;  %s961_s12 = smov 0   ;;  %s963_s13 = smov 0  }
   0x5   :  { %s965_s14 = smov 0   ;;  %s967_s15 = smov 0  }
   0x6 LB: > { %s982_s16 = sadd.s32 4294967295, %s932_s15   ;;  %s718_s17 = sadd.s32 4294967294, %s932_s15   ;;  %s932_s15 = sphi %s967_s15, %s1221_s15   ;;  %s928_s14 = sphi %s965_s14, %s1220_s14   ;;  %s924_s13 = sphi %s963_s13, %s1219_s13   ;;  %s920_s12 = sphi %s961_s12, %s1218_s12  }
   0x7   : > { %p40_p0 = scmp.ne.s32.totalorder %s924_s13, %s920_s12  ;;  %p41_p1 = scmp.eq.s32.totalorder %s982_s16, 0 }
   0x8   : > { %p106_p2 = scmp.eq.s32.totalorder %s982_s16, 1  ;;  %p112_p3 = scmp.eq.s32.totalorder %s718_s17, 1 }
   0x9   : > { %p991_p4 = por %p41_p1, %p40_p0  ;;  %p719_p5 = scmp.ge.s32.totalorder %s932_s15, 1 }
   0xa   : > { %p996_p6 = por %p112_p3, %p40_p0  ;;  %p119_p7 = scmp.lt.s32.totalorder %s932_s15, 3 }
   0xb   : > { %s130_s22 = sshll.u32 %s1209_s1, 4  ;;  %s934_s24 = smov [#allocation5]   ;;  %s131_s22 = int_to_ptr.hbm [resolvable:$true] %s130_s22 }
   0xc   : > { %p1004_p8 = pnand %p719_p5, %p119_p7  ;;  %s132_s25 = sshll.u32 %s934_s24, 4  ;;  %s133_s25 = int_to_ptr.vmem [resolvable:$true] %s132_s25 }
   0xd   : > { %s1014_s26 = sadd.s32 1, %s932_s15   ;;  %s935_s27 = smov 128  }
   0xe   : > { %p746_p9 = pneg %p1004_p8  ;;  %s936_s28 = smov 8  }
   0xf   : > { %s24_s29 = ssub.s32 %s932_s15, %s1014_s26  ;;  %s27_s30 = sadd.s32 1, %s928_s14 }
  0x10   : > { %p747_p10 = pnand %p746_p9, %p41_p1  ;;  %p25_p12 = scmp.eq.s32.totalorder %s24_s29, 0 }
  0x11   : > { %p34_p13 = scmp.ne.s32.totalorder %s928_s14, %s924_s13  ;;  %p35_p0 = scmp.eq.s32.totalorder %s932_s15, 0 }
  0x12   : > { %749 = dma.hbm_to_vmem [thread:$0]  (!%p747_p10), %s131_s22, 8192, %s133_s25, [#allocation6], %s935_s27, %s935_s27, %s936_s28  }
  0x13   : > { %p759_p3 = scmp.lt.s32.totalorder %s932_s15, 2  ;;  %p36_p5 = por %p35_p0, %p34_p13 }
  0x14   : > { %s1024_s4 = scalar_select %p25_p12, %s928_s14, %s27_s30  }
  0x15   : > { %p1028_p7 = por %p106_p2, %p34_p13  ;;  %s149_s6 = sand.u32 1, %s928_s14  }
  0x16   : > { %s736_s7 = sshll.u32 %s932_s15, 9  ;;  %s722_s8 = sshll.u32 %s149_s6, 9 }
  0x17   : > { %s159_s11 = scalar_lea.hbm %s1208_s0, %s736_s7  ;;  %s153_s20 = scalar_lea.vmem [#allocation2], %s722_s8 }
  0x18   : > { %s160_s17 = sshll.u32 %s159_s11, 4  ;;  %s162_s21 = sshll.u32 %s153_s20, 4  ;;  %s161_s17 = int_to_ptr.hbm [resolvable:$true] %s160_s17  ;;  %s163_s21 = int_to_ptr.vmem [resolvable:$true] %s162_s21 }
  0x19   : > { %p1039_p9 = pnand %p759_p3, %p36_p5  ;;  %s150_s24 = scalar_lea.sflag [#allocation3], %s149_s6 }
  0x1a   : > { %s832_s25 = sshra.s32 %s161_s17, 4  ;;  %s839_s30 = scalar_lea.hbm %s1208_s0, 1024  ;;  %s833_s25 = int_to_ptr.hbm [resolvable:$true] %s832_s25 }
  0x1b   : > { %s834_s27 = scalar_lea.hbm %s833_s25, 512  ;;  %p836_p10 = pneg %p1039_p9 }
  0x1c   : > { %p835_p2 = scmp.ne.s32.totalorder %s833_s25, %s834_s27  ;;  %p840_p0 = scmp.lt.s32.totalorder %s833_s25, %s1208_s0 }
  0x1d   : > { %p841_p3 = scmp.lt.s32.totalorder %s839_s30, %s834_s27 }
  0x1e   : > { %p837_p12 = pnand %p836_p10, %p835_p2 }
  0x1f   : > { %p842_p5 = por %p841_p3, %p840_p0 }
  0x20   : > { %p838_p13 = pneg %p837_p12 }
  0x22   : > { %p843_p11 = pnand %p842_p5, %p838_p13 }
  0x24   : > { %846 = shalt.err (!%p843_p11)
}
  0x25   : > { %s937_s6 = smov 512   ;;  %s938_s9 = smov 32  }
  0x26   : > { %753 = dma.hbm_to_vmem [thread:$0]  (!%p1039_p9), %s161_s17, 8192, %s163_s21, %s150_s24, %s937_s6, %s937_s6, %s938_s9  }
  0x27   : > { %174 = sbr.rel (%p1004_p8) target bundleno = 340 (0x154), region = 32  ;;  %s1056_s10 = sand.u32 (!%p1004_p8), 1, %s924_s13  }
  0x28   : > { %s727_s11 = sshll.u32 (!%p1004_p8), %s1056_s10, 9  ;;  %s177_s20 = scalar_lea.sflag (!%p1004_p8), [#allocation3], %s1056_s10 }
  0x29   : > { %s1060_s25 = scalar_lea.vmem (!%p1004_p8), [#allocation2], %s727_s11 }
  0x2c   : > { %907 = dma.done.wait (%p991_p4), %s177_s20, 8192  }
  0x2d   : > { %909 = vsyncadd (%p991_p4), %s177_s20, 4294959104 }
  0x2e   : > { %911 = dma.done.wait (%p41_p1), [#allocation6], 8192  }
  0x2f   : > { %913 = vsyncadd (%p41_p1), [#allocation6], 4294959104  ;;  %v322_v0 = vld [vmem:[#allocation5 + $0x178] sm:$0xff]  ;;  %v321_v2 = vld [vmem:[#allocation5 + $0x170] sm:$0xff]  ;;  %s729_s17 = sshll.u32 %s1056_s10, 7  ;;  %s737_s22 = sshll.u32 %s982_s16, 7 }
  0x30   : > { %v290_v1 = vld [vmem:[#allocation5 + $0x78] sm:$0xff]  ;;  %473 = vmatpush.msra.mxu2 %v322_v0  ;;  %v289_v4 = vld [vmem:[#allocation5 + $0x70] sm:$0xff]  ;;  %v320_v6 = vld [vmem:[#allocation5 + $0x168] sm:$0xff]  ;;  %s1142_s21 = scalar_lea.vmem [#allocation7], %s729_s17  ;;  %s631_s28 = scalar_lea.hbm %s1211_s3, %s737_s22 }
  0x31   : > { %343 = vmatpush.msra.mxu0 %v290_v1  ;;  %v338_v3 = vld [vmem:[#allocation5 + $0x1f8] sm:$0xff]  ;;  %v337_v7 = vld [vmem:[#allocation5 + $0x1f0] sm:$0xff]  ;;  %v288_v8 = vld [vmem:[#allocation5 + $0x68] sm:$0xff]  ;;  %s632_s29 = sshll.u32 %s1142_s21, 4  ;;  %s634_s30 = sshll.u32 %s631_s28, 4  ;;  %s633_s29 = int_to_ptr.vmem [resolvable:$true] %s632_s29  ;;  %s635_s30 = int_to_ptr.hbm [resolvable:$true] %s634_s30 }
  0x32   : > { %v306_v5 = vld [vmem:[#allocation5 + $0xf8] sm:$0xff]  ;;  %538 = vmatpush.msra.mxu3 %v338_v3  ;;  %474 = vmatpush.msra.mxu2 %v321_v2  ;;  %v305_v9 = vld [vmem:[#allocation5 + $0xf0] sm:$0xff]  ;;  %v336_v10 = vld [vmem:[#allocation5 + $0x1e8] sm:$0xff]  ;;  %s620_s16 = scalar_lea.sflag [#allocation4], %s1056_s10  ;;  %s876_s7 = sshra.s32 %s635_s30, 4  ;;  %s877_s7 = int_to_ptr.hbm [resolvable:$true] %s876_s7 }
  0x33   : > { %408 = vmatpush.msra.mxu1 %v306_v5  ;;  %344 = vmatpush.msra.mxu0 %v289_v4  ;;  %v319_v11 = vld [vmem:[#allocation5 + $0x160] sm:$0xff]  ;;  %v304_v13 = vld [vmem:[#allocation5 + $0xe8] sm:$0xff]  ;;  %v318_v16 = vld [vmem:[#allocation5 + $0x158] sm:$0xff]  ;;  %s878_s8 = scalar_lea.hbm %s877_s7, 128  ;;  %s882_s11 = scalar_lea.hbm %s1211_s3, 256 }
  0x34   : > { %539 = vmatpush.msra.mxu3 %v337_v7  ;;  %v287_v12 = vld [vmem:[#allocation5 + $0x60] sm:$0xff]  ;;  %475 = vmatpush.msra.mxu2 %v320_v6  ;;  %v286_v17 = vld [vmem:[#allocation5 + $0x58] sm:$0xff]  ;;  %v317_v20 = vld [vmem:[#allocation5 + $0x150] sm:$0xff]  ;;  %p879_p1 = scmp.ne.s32.totalorder %s877_s7, %s878_s8  ;;  %p883_p11 = scmp.lt.s32.totalorder %s877_s7, %s1211_s3 }
  0x35   : > { %409 = vmatpush.msra.mxu1 %v305_v9  ;;  %345 = vmatpush.msra.mxu0 %v288_v8  ;;  %v335_v14 = vld [vmem:[#allocation5 + $0x1e0] sm:$0xff]  ;;  %v334_v18 = vld [vmem:[#allocation5 + $0x1d8] sm:$0xff]  ;;  %v285_v21 = vld [vmem:[#allocation5 + $0x50] sm:$0xff]  ;;  %p884_p9 = scmp.lt.s32.totalorder %s882_s11, %s878_s8 }
  0x36   : > { %v303_v15 = vld [vmem:[#allocation5 + $0xe0] sm:$0xff]  ;;  %540 = vmatpush.msra.mxu3 %v336_v10  ;;  %476 = vmatpush.msra.mxu2 %v319_v11  ;;  %v302_v19 = vld [vmem:[#allocation5 + $0xd8] sm:$0xff]  ;;  %v333_v22 = vld [vmem:[#allocation5 + $0x1d0] sm:$0xff]  ;;  %p880_p4 = pnand %p879_p1, %p1028_p7 }
  0x37   : > { %410 = vmatpush.msra.mxu1 %v304_v13  ;;  %346 = vmatpush.msra.mxu0 %v287_v12  ;;  %v301_v23 = vld [vmem:[#allocation5 + $0xd0] sm:$0xff]  ;;  %v316_v24 = vld [vmem:[#allocation5 + $0x148] sm:$0xff]  ;;  %v315_v28 = vld [vmem:[#allocation5 + $0x140] sm:$0xff]  ;;  %p885_p2 = por %p884_p9, %p883_p11 }
  0x38   : > { %541 = vmatpush.msra.mxu3 %v335_v14  ;;  %477 = vmatpush.msra.mxu2 %v318_v16  ;;  %v284_v25 = vld [vmem:[#allocation5 + $0x48] sm:$0xff]  ;;  %v283_v29 = vld [vmem:[#allocation5 + $0x40] sm:$0xff]  ;;  %v314_v32 = vld [vmem:[#allocation5 + $0x138] sm:$0xff]  ;;  %p881_p8 = pneg %p880_p4 }
  0x39   : > { %411 = vmatpush.msra.mxu1 %v303_v15  ;;  %347 = vmatpush.msra.mxu0 %v286_v17  ;;  %v332_v26 = vld [vmem:[#allocation5 + $0x1c8] sm:$0xff]  ;;  %v331_v30 = vld [vmem:[#allocation5 + $0x1c0] sm:$0xff]  ;;  %v282_v33 = vld [vmem:[#allocation5 + $0x38] sm:$0xff] }
  0x3a   : > { %542 = vmatpush.msra.mxu3 %v334_v18  ;;  %478 = vmatpush.msra.mxu2 %v317_v20  ;;  %v300_v27 = vld [vmem:[#allocation5 + $0xc8] sm:$0xff]  ;;  %v299_v31 = vld [vmem:[#allocation5 + $0xc0] sm:$0xff]  ;;  %v330_v34 = vld [vmem:[#allocation5 + $0x1b8] sm:$0xff]  ;;  %p886_p10 = pnand %p885_p2, %p881_p8 }
  0x3b   : > { %412 = vmatpush.msra.mxu1 %v302_v19  ;;  %348 = vmatpush.msra.mxu0 %v285_v21  ;;  %v298_v35 = vld [vmem:[#allocation5 + $0xb8] sm:$0xff]  ;;  %v313_v36 = vld [vmem:[#allocation5 + $0x130] sm:$0xff]  ;;  %v312_v40 = vld [vmem:[#allocation5 + $0x128] sm:$0xff] }
  0x3c   : > { %543 = vmatpush.msra.mxu3 %v333_v22  ;;  %479 = vmatpush.msra.mxu2 %v316_v24  ;;  %v281_v37 = vld [vmem:[#allocation5 + $0x30] sm:$0xff]  ;;  %v280_v41 = vld [vmem:[#allocation5 + $0x28] sm:$0xff]  ;;  %v311_v44 = vld [vmem:[#allocation5 + $0x120] sm:$0xff] }
  0x3d   : > { %413 = vmatpush.msra.mxu1 %v301_v23  ;;  %349 = vmatpush.msra.mxu0 %v284_v25  ;;  %v329_v38 = vld [vmem:[#allocation5 + $0x1b0] sm:$0xff]  ;;  %v328_v42 = vld [vmem:[#allocation5 + $0x1a8] sm:$0xff]  ;;  %v279_v45 = vld [vmem:[#allocation5 + $0x20] sm:$0xff] }
  0x3e   : > { %544 = vmatpush.msra.mxu3 %v332_v26  ;;  %480 = vmatpush.msra.mxu2 %v315_v28  ;;  %v297_v39 = vld [vmem:[#allocation5 + $0xb0] sm:$0xff]  ;;  %v296_v43 = vld [vmem:[#allocation5 + $0xa8] sm:$0xff]  ;;  %v327_v46 = vld [vmem:[#allocation5 + $0x1a0] sm:$0xff] }
  0x3f   : > { %414 = vmatpush.msra.mxu1 %v300_v27  ;;  %350 = vmatpush.msra.mxu0 %v283_v29  ;;  %v295_v47 = vld [vmem:[#allocation5 + $0xa0] sm:$0xff]  ;;  %v310_v48 = vld [vmem:[#allocation5 + $0x118] sm:$0xff]  ;;  %v309_v52 = vld [vmem:[#allocation5 + $0x110] sm:$0xff] }
  0x40   : > { %545 = vmatpush.msra.mxu3 %v331_v30  ;;  %481 = vmatpush.msra.mxu2 %v314_v32  ;;  %v278_v49 = vld [vmem:[#allocation5 + $0x18] sm:$0xff]  ;;  %v277_v53 = vld [vmem:[#allocation5 + $0x10] sm:$0xff]  ;;  %v308_v56 = vld [vmem:[#allocation5 + $0x108] sm:$0xff] }
  0x41   : > { %415 = vmatpush.msra.mxu1 %v299_v31  ;;  %351 = vmatpush.msra.mxu0 %v282_v33  ;;  %v326_v50 = vld [vmem:[#allocation5 + $0x198] sm:$0xff]  ;;  %v325_v54 = vld [vmem:[#allocation5 + $0x190] sm:$0xff]  ;;  %v276_v57 = vld [vmem:[#allocation5 + $0x8] sm:$0xff] }
  0x42   : > { %546 = vmatpush.msra.mxu3 %v330_v34  ;;  %482 = vmatpush.msra.mxu2 %v313_v36  ;;  %v294_v51 = vld [vmem:[#allocation5 + $0x98] sm:$0xff]  ;;  %v293_v55 = vld [vmem:[#allocation5 + $0x90] sm:$0xff]  ;;  %v324_v58 = vld [vmem:[#allocation5 + $0x188] sm:$0xff] }
  0x43   : > { %416 = vmatpush.msra.mxu1 %v298_v35  ;;  %352 = vmatpush.msra.mxu0 %v281_v37  ;;  %v292_v59 = vld [vmem:[#allocation5 + $0x88] sm:$0xff]  ;;  %v307_v60 = vld [vmem:[#allocation5 + $0x100] sm:$0xff]  ;;  %v213_v62 = vld [vmem:[%s1060_s25 + $0x10] sm:$0xff] }
  0x44   : > { %547 = vmatpush.msra.mxu3 %v329_v38  ;;  %483 = vmatpush.msra.mxu2 %v312_v40  ;;  %v275_v61 = vld [vmem:[#allocation5] sm:$0xff]  ;;  %v214_v1 = vld [vmem:[%s1060_s25 + $0x18] sm:$0xff]  ;;  %v212_v3 = vld [vmem:[%s1060_s25 + $0x8] sm:$0xff] }
  0x45   : > { %417 = vmatpush.msra.mxu1 %v297_v39  ;;  %353 = vmatpush.msra.mxu0 %v280_v41  ;;  %v323_v63 = vld [vmem:[#allocation5 + $0x180] sm:$0xff]  ;;  %v217_v4 = vld [vmem:[%s1060_s25 + $0x30] sm:$0xff]  ;;  %v218_v6 = vld [vmem:[%s1060_s25 + $0x38] sm:$0xff] }
  0x46   : > { %548 = vmatpush.msra.mxu3 %v328_v42  ;;  %484 = vmatpush.msra.mxu2 %v311_v44  ;;  %v211_v0 = vld [vmem:[%s1060_s25] sm:$0xff]  ;;  %v216_v7 = vld [vmem:[%s1060_s25 + $0x28] sm:$0xff]  ;;  %v221_v8 = vld [vmem:[%s1060_s25 + $0x50] sm:$0xff] }
  0x47   : > { %418 = vmatpush.msra.mxu1 %v296_v43  ;;  %354 = vmatpush.msra.mxu0 %v279_v45  ;;  %v291_v2 = vld [vmem:[#allocation5 + $0x80] sm:$0xff]  ;;  %v222_v10 = vld [vmem:[%s1060_s25 + $0x58] sm:$0xff]  ;;  %v220_v11 = vld [vmem:[%s1060_s25 + $0x48] sm:$0xff] }
  0x48   : > { %549 = vmatpush.msra.mxu3 %v327_v46  ;;  %485 = vmatpush.msra.mxu2 %v310_v48  ;;  %v215_v5 = vld [vmem:[%s1060_s25 + $0x20] sm:$0xff]  ;;  %v225_v12 = vld [vmem:[%s1060_s25 + $0x70] sm:$0xff]  ;;  %v226_v14 = vld [vmem:[%s1060_s25 + $0x78] sm:$0xff] }
  0x49   : > { %419 = vmatpush.msra.mxu1 %v295_v47  ;;  %355 = vmatpush.msra.mxu0 %v278_v49  ;;  %v219_v9 = vld [vmem:[%s1060_s25 + $0x40] sm:$0xff]  ;;  %v224_v15 = vld [vmem:[%s1060_s25 + $0x68] sm:$0xff]  ;;  %v229_v16 = vld [vmem:[%s1060_s25 + $0x90] sm:$0xff] }
  0x4a   : > { %550 = vmatpush.msra.mxu3 %v326_v50  ;;  %486 = vmatpush.msra.mxu2 %v309_v52  ;;  %v223_v13 = vld [vmem:[%s1060_s25 + $0x60] sm:$0xff]  ;;  %v230_v18 = vld [vmem:[%s1060_s25 + $0x98] sm:$0xff]  ;;  %v228_v19 = vld [vmem:[%s1060_s25 + $0x88] sm:$0xff] }
  0x4b   : > { %420 = vmatpush.msra.mxu1 %v294_v51  ;;  %356 = vmatpush.msra.mxu0 %v277_v53  ;;  %v227_v17 = vld [vmem:[%s1060_s25 + $0x80] sm:$0xff]  ;;  %v233_v20 = vld [vmem:[%s1060_s25 + $0xb0] sm:$0xff]  ;;  %v234_v22 = vld [vmem:[%s1060_s25 + $0xb8] sm:$0xff] }
  0x4c   : > { %551 = vmatpush.msra.mxu3 %v325_v54  ;;  %487 = vmatpush.msra.mxu2 %v308_v56  ;;  %v231_v21 = vld [vmem:[%s1060_s25 + $0xa0] sm:$0xff]  ;;  %v232_v23 = vld [vmem:[%s1060_s25 + $0xa8] sm:$0xff]  ;;  %v237_v24 = vld [vmem:[%s1060_s25 + $0xd0] sm:$0xff] }
  0x4d   : > { %421 = vmatpush.msra.mxu1 %v293_v55  ;;  %357 = vmatpush.msra.mxu0 %v276_v57  ;;  %v235_v25 = vld [vmem:[%s1060_s25 + $0xc0] sm:$0xff]  ;;  %v238_v26 = vld [vmem:[%s1060_s25 + $0xd8] sm:$0xff]  ;;  %v236_v27 = vld [vmem:[%s1060_s25 + $0xc8] sm:$0xff] }
  0x4e   : > { %552 = vmatpush.msra.mxu3 %v324_v58  ;;  %488 = vmatpush.msra.mxu2 %v307_v60  ;;  %v241_v28 = vld [vmem:[%s1060_s25 + $0xf0] sm:$0xff]  ;;  %v239_v29 = vld [vmem:[%s1060_s25 + $0xe0] sm:$0xff]  ;;  %v242_v30 = vld [vmem:[%s1060_s25 + $0xf8] sm:$0xff] }
  0x4f   : > { %422 = vmatpush.msra.mxu1 %v292_v59  ;;  %358 = vmatpush.msra.mxu0 %v275_v61  ;;  %v240_v31 = vld [vmem:[%s1060_s25 + $0xe8] sm:$0xff]  ;;  %v245_v32 = vld [vmem:[%s1060_s25 + $0x110] sm:$0xff]  ;;  %v243_v33 = vld [vmem:[%s1060_s25 + $0x100] sm:$0xff] }
  0x50   : > { %489 = vmatmul.f32.vlgmr.msra.gmra.mxu2 %v213_v62  ;;  %553 = vmatpush.msra.mxu3 %v323_v63  ;;  %v246_v34 = vld [vmem:[%s1060_s25 + $0x118] sm:$0xff]  ;;  %v244_v35 = vld [vmem:[%s1060_s25 + $0x108] sm:$0xff]  ;;  %v249_v36 = vld [vmem:[%s1060_s25 + $0x130] sm:$0xff] }
  0x51   : > { %359 = vmatmul.f32.vlgmr.msra.gmra.mxu0 %v211_v0  ;;  %554 = vmatmul.f32.vlgmr.msra.gmra.mxu3 %v214_v1  ;;  %v247_v37 = vld [vmem:[%s1060_s25 + $0x120] sm:$0xff]  ;;  %v250_v38 = vld [vmem:[%s1060_s25 + $0x138] sm:$0xff]  ;;  %v248_v39 = vld [vmem:[%s1060_s25 + $0x128] sm:$0xff] }
  0x52   : > { %423 = vmatpush.msra.mxu1 %v291_v2  ;;  %v253_v40 = vld [vmem:[%s1060_s25 + $0x150] sm:$0xff]  ;;  %v251_v41 = vld [vmem:[%s1060_s25 + $0x140] sm:$0xff]  ;;  %v254_v42 = vld [vmem:[%s1060_s25 + $0x158] sm:$0xff] }
  0x53   : > { %424 = vmatmul.f32.vlgmr.msra.gmra.mxu1 %v212_v3  ;;  %v252_v43 = vld [vmem:[%s1060_s25 + $0x148] sm:$0xff]  ;;  %v257_v44 = vld [vmem:[%s1060_s25 + $0x170] sm:$0xff]  ;;  %v255_v45 = vld [vmem:[%s1060_s25 + $0x160] sm:$0xff] }
  0x54   : > { %v258_v46 = vld [vmem:[%s1060_s25 + $0x178] sm:$0xff]  ;;  %v256_v47 = vld [vmem:[%s1060_s25 + $0x168] sm:$0xff]  ;;  %v261_v48 = vld [vmem:[%s1060_s25 + $0x190] sm:$0xff] }
  0x55   : > { %v259_v49 = vld [vmem:[%s1060_s25 + $0x180] sm:$0xff]  ;;  %v262_v50 = vld [vmem:[%s1060_s25 + $0x198] sm:$0xff]  ;;  %v260_v51 = vld [vmem:[%s1060_s25 + $0x188] sm:$0xff] }
  0x56   : > { %v265_v52 = vld [vmem:[%s1060_s25 + $0x1b0] sm:$0xff]  ;;  %v263_v53 = vld [vmem:[%s1060_s25 + $0x1a0] sm:$0xff]  ;;  %v266_v54 = vld [vmem:[%s1060_s25 + $0x1b8] sm:$0xff] }
  0x57   : > { %v264_v55 = vld [vmem:[%s1060_s25 + $0x1a8] sm:$0xff]  ;;  %v269_v56 = vld [vmem:[%s1060_s25 + $0x1d0] sm:$0xff]  ;;  %v267_v57 = vld [vmem:[%s1060_s25 + $0x1c0] sm:$0xff] }
  0x58   : > { %492 = vmatmul.f32.gmra.mxu2 %v217_v4  ;;  %v270_v58 = vld [vmem:[%s1060_s25 + $0x1d8] sm:$0xff]  ;;  %v268_v59 = vld [vmem:[%s1060_s25 + $0x1c8] sm:$0xff]  ;;  %v273_v60 = vld [vmem:[%s1060_s25 + $0x1f0] sm:$0xff] }
  0x59   : > { %362 = vmatmul.f32.gmra.mxu0 %v215_v5  ;;  %557 = vmatmul.f32.gmra.mxu3 %v218_v6  ;;  %v271_v61 = vld [vmem:[%s1060_s25 + $0x1e0] sm:$0xff]  ;;  %v274_v62 = vld [vmem:[%s1060_s25 + $0x1f8] sm:$0xff]  ;;  %v272_v63 = vld [vmem:[%s1060_s25 + $0x1e8] sm:$0xff] }
  0x5a   : > { %v1137_v0 = vld [vmem:[%s1210_s2] ss:$0 sm:$0xff] }
  0x5b   : > { %427 = vmatmul.f32.gmra.mxu1 %v216_v7 }
  0x60   : > { %495 = vmatmul.f32.gmra.mxu2 %v221_v8 }
  0x61   : > { %365 = vmatmul.f32.gmra.mxu0 %v219_v9  ;;  %560 = vmatmul.f32.gmra.mxu3 %v222_v10 }
  0x63   : > { %430 = vmatmul.f32.gmra.mxu1 %v220_v11 }
  0x68   : > { %498 = vmatmul.f32.gmra.mxu2 %v225_v12 }
  0x69   : > { %368 = vmatmul.f32.gmra.mxu0 %v223_v13  ;;  %563 = vmatmul.f32.gmra.mxu3 %v226_v14 }
  0x6b   : > { %433 = vmatmul.f32.gmra.mxu1 %v224_v15 }
  0x70   : > { %501 = vmatmul.f32.gmra.mxu2 %v229_v16 }
  0x71   : > { %371 = vmatmul.f32.gmra.mxu0 %v227_v17  ;;  %566 = vmatmul.f32.gmra.mxu3 %v230_v18 }
  0x73   : > { %436 = vmatmul.f32.gmra.mxu1 %v228_v19 }
  0x78   : > { %504 = vmatmul.f32.gmra.mxu2 %v233_v20 }
  0x79   : > { %374 = vmatmul.f32.gmra.mxu0 %v231_v21  ;;  %569 = vmatmul.f32.gmra.mxu3 %v234_v22 }
  0x7b   : > { %439 = vmatmul.f32.gmra.mxu1 %v232_v23 }
  0x80   : > { %507 = vmatmul.f32.gmra.mxu2 %v237_v24 }
  0x81   : > { %377 = vmatmul.f32.gmra.mxu0 %v235_v25  ;;  %572 = vmatmul.f32.gmra.mxu3 %v238_v26 }
  0x83   : > { %442 = vmatmul.f32.gmra.mxu1 %v236_v27 }
  0x88   : > { %510 = vmatmul.f32.gmra.mxu2 %v241_v28 }
  0x89   : > { %380 = vmatmul.f32.gmra.mxu0 %v239_v29  ;;  %575 = vmatmul.f32.gmra.mxu3 %v242_v30 }
  0x8b   : > { %445 = vmatmul.f32.gmra.mxu1 %v240_v31 }
  0x90   : > { %513 = vmatmul.f32.gmra.mxu2 %v245_v32 }
  0x91   : > { %383 = vmatmul.f32.gmra.mxu0 %v243_v33  ;;  %578 = vmatmul.f32.gmra.mxu3 %v246_v34 }
  0x93   : > { %448 = vmatmul.f32.gmra.mxu1 %v244_v35 }
  0x98   : > { %516 = vmatmul.f32.gmra.mxu2 %v249_v36 }
  0x99   : > { %386 = vmatmul.f32.gmra.mxu0 %v247_v37  ;;  %581 = vmatmul.f32.gmra.mxu3 %v250_v38 }
  0x9b   : > { %451 = vmatmul.f32.gmra.mxu1 %v248_v39 }
  0xa0   : > { %519 = vmatmul.f32.gmra.mxu2 %v253_v40 }
  0xa1   : > { %389 = vmatmul.f32.gmra.mxu0 %v251_v41  ;;  %584 = vmatmul.f32.gmra.mxu3 %v254_v42 }
  0xa3   : > { %454 = vmatmul.f32.gmra.mxu1 %v252_v43 }
  0xa8   : > { %522 = vmatmul.f32.gmra.mxu2 %v257_v44 }
  0xa9   : > { %392 = vmatmul.f32.gmra.mxu0 %v255_v45  ;;  %587 = vmatmul.f32.gmra.mxu3 %v258_v46 }
  0xab   : > { %457 = vmatmul.f32.gmra.mxu1 %v256_v47 }
  0xb0   : > { %525 = vmatmul.f32.gmra.mxu2 %v261_v48 }
  0xb1   : > { %395 = vmatmul.f32.gmra.mxu0 %v259_v49  ;;  %590 = vmatmul.f32.gmra.mxu3 %v262_v50 }
  0xb3   : > { %460 = vmatmul.f32.gmra.mxu1 %v260_v51 }
  0xb8   : > { %528 = vmatmul.f32.gmra.mxu2 %v265_v52 }
  0xb9   : > { %398 = vmatmul.f32.gmra.mxu0 %v263_v53  ;;  %593 = vmatmul.f32.gmra.mxu3 %v266_v54 }
  0xbb   : > { %463 = vmatmul.f32.gmra.mxu1 %v264_v55 }
  0xc0   : > { %531 = vmatmul.f32.gmra.mxu2 %v269_v56 }
  0xc1   : > { %401 = vmatmul.f32.gmra.mxu0 %v267_v57  ;;  %596 = vmatmul.f32.gmra.mxu3 %v270_v58 }
  0xc3   : > { %466 = vmatmul.f32.gmra.mxu1 %v268_v59 }
  0xc8   : > { %534 = vmatmul.f32.gmra.mxu2 %v273_v60 }
  0xc9   : > { %404 = vmatmul.f32.gmra.mxu0 %v271_v61  ;;  %599 = vmatmul.f32.gmra.mxu3 %v274_v62 }
  0xcb   : > { %469 = vmatmul.f32.gmra.mxu1 %v272_v63 }
  0xce   : > { %v360_v1 = vpop.f32.mrf.mxu0 }
  0xcf   : > { %v361_v2 = vadd.f32 %v1137_v0, %v360_v1 }
  0xd0   : > { %v425_v3 = vpop.f32.mrf.mxu1 }
  0xd1   : > { %v426_v4 = vadd.f32 %v425_v3, %v361_v2 }
  0xd3   : > { %v490_v5 = vpop.f32.mrf.mxu2 }
  0xd4   : > { %v491_v6 = vadd.f32 %v490_v5, %v426_v4  ;;  %v555_v7 = vpop.f32.mrf.mxu3 }
  0xd6   : > { %v556_v8 = vadd.f32 %v555_v7, %v491_v6  ;;  %v363_v9 = vpop.f32.mrf.mxu0 }
  0xd7   : > { %v364_v10 = vadd.f32 %v1137_v0, %v363_v9 }
  0xd8   : > { %603 = vst [vmem:[%s1142_s21] sm:$0xff] %v556_v8  ;;  %v428_v11 = vpop.f32.mrf.mxu1 }
  0xd9   : > { %v429_v12 = vadd.f32 %v428_v11, %v364_v10 }
  0xdb   : > { %v493_v13 = vpop.f32.mrf.mxu2 }
  0xdc   : > { %v494_v14 = vadd.f32 %v493_v13, %v429_v12  ;;  %v558_v15 = vpop.f32.mrf.mxu3 }
  0xde   : > { %v559_v16 = vadd.f32 %v558_v15, %v494_v14  ;;  %v366_v17 = vpop.f32.mrf.mxu0 }
  0xdf   : > { %v367_v18 = vadd.f32 %v1137_v0, %v366_v17 }
  0xe0   : > { %604 = vst [vmem:[%s1142_s21 + $0x8] sm:$0xff] %v559_v16  ;;  %v431_v19 = vpop.f32.mrf.mxu1 }
  0xe1   : > { %v432_v20 = vadd.f32 %v431_v19, %v367_v18 }
  0xe3   : > { %v496_v21 = vpop.f32.mrf.mxu2 }
  0xe4   : > { %v497_v22 = vadd.f32 %v496_v21, %v432_v20  ;;  %v561_v23 = vpop.f32.mrf.mxu3 }
  0xe6   : > { %v562_v24 = vadd.f32 %v561_v23, %v497_v22  ;;  %v369_v25 = vpop.f32.mrf.mxu0 }
  0xe7   : > { %v370_v26 = vadd.f32 %v1137_v0, %v369_v25 }
  0xe8   : > { %605 = vst [vmem:[%s1142_s21 + $0x10] sm:$0xff] %v562_v24  ;;  %v434_v27 = vpop.f32.mrf.mxu1 }
  0xe9   : > { %v435_v28 = vadd.f32 %v434_v27, %v370_v26 }
  0xeb   : > { %v499_v29 = vpop.f32.mrf.mxu2 }
  0xec   : > { %v500_v30 = vadd.f32 %v499_v29, %v435_v28  ;;  %v564_v31 = vpop.f32.mrf.mxu3 }
  0xee   : > { %v565_v32 = vadd.f32 %v564_v31, %v500_v30  ;;  %v372_v33 = vpop.f32.mrf.mxu0 }
  0xef   : > { %v373_v34 = vadd.f32 %v1137_v0, %v372_v33 }
  0xf0   : > { %606 = vst [vmem:[%s1142_s21 + $0x18] sm:$0xff] %v565_v32  ;;  %v437_v35 = vpop.f32.mrf.mxu1 }
  0xf1   : > { %v438_v36 = vadd.f32 %v437_v35, %v373_v34 }
  0xf3   : > { %v502_v37 = vpop.f32.mrf.mxu2 }
  0xf4   : > { %v503_v38 = vadd.f32 %v502_v37, %v438_v36  ;;  %v567_v39 = vpop.f32.mrf.mxu3 }
  0xf6   : > { %v568_v40 = vadd.f32 %v567_v39, %v503_v38  ;;  %v375_v41 = vpop.f32.mrf.mxu0 }
  0xf7   : > { %v376_v42 = vadd.f32 %v1137_v0, %v375_v41 }
  0xf8   : > { %607 = vst [vmem:[%s1142_s21 + $0x20] sm:$0xff] %v568_v40  ;;  %v440_v43 = vpop.f32.mrf.mxu1 }
  0xf9   : > { %v441_v44 = vadd.f32 %v440_v43, %v376_v42 }
  0xfb   : > { %v505_v45 = vpop.f32.mrf.mxu2 }
  0xfc   : > { %v506_v46 = vadd.f32 %v505_v45, %v441_v44  ;;  %v570_v47 = vpop.f32.mrf.mxu3 }
  0xfe   : > { %v571_v48 = vadd.f32 %v570_v47, %v506_v46  ;;  %v378_v49 = vpop.f32.mrf.mxu0 }
  0xff   : > { %v379_v50 = vadd.f32 %v1137_v0, %v378_v49 }
 0x100   : > { %608 = vst [vmem:[%s1142_s21 + $0x28] sm:$0xff] %v571_v48  ;;  %v443_v51 = vpop.f32.mrf.mxu1 }
 0x101   : > { %v444_v52 = vadd.f32 %v443_v51, %v379_v50 }
 0x103   : > { %v508_v53 = vpop.f32.mrf.mxu2 }
 0x104   : > { %v509_v54 = vadd.f32 %v508_v53, %v444_v52  ;;  %v573_v55 = vpop.f32.mrf.mxu3 }
 0x106   : > { %v574_v56 = vadd.f32 %v573_v55, %v509_v54  ;;  %v381_v57 = vpop.f32.mrf.mxu0 }
 0x107   : > { %v382_v58 = vadd.f32 %v1137_v0, %v381_v57 }
 0x108   : > { %609 = vst [vmem:[%s1142_s21 + $0x30] sm:$0xff] %v574_v56  ;;  %v446_v59 = vpop.f32.mrf.mxu1 }
 0x109   : > { %v447_v60 = vadd.f32 %v446_v59, %v382_v58 }
 0x10b   : > { %v511_v61 = vpop.f32.mrf.mxu2 }
 0x10c   : > { %v512_v62 = vadd.f32 %v511_v61, %v447_v60  ;;  %v576_v63 = vpop.f32.mrf.mxu3 }
 0x10e   : > { %v577_v1 = vadd.f32 %v576_v63, %v512_v62  ;;  %v384_v2 = vpop.f32.mrf.mxu0 }
 0x10f   : > { %v385_v3 = vadd.f32 %v1137_v0, %v384_v2 }
 0x110   : > { %610 = vst [vmem:[%s1142_s21 + $0x38] sm:$0xff] %v577_v1  ;;  %v449_v4 = vpop.f32.mrf.mxu1 }
 0x111   : > { %v450_v5 = vadd.f32 %v449_v4, %v385_v3 }
 0x113   : > { %v514_v6 = vpop.f32.mrf.mxu2 }
 0x114   : > { %v515_v7 = vadd.f32 %v514_v6, %v450_v5  ;;  %v579_v8 = vpop.f32.mrf.mxu3 }
 0x116   : > { %v580_v9 = vadd.f32 %v579_v8, %v515_v7  ;;  %v387_v10 = vpop.f32.mrf.mxu0 }
 0x117   : > { %v388_v11 = vadd.f32 %v1137_v0, %v387_v10 }
 0x118   : > { %611 = vst [vmem:[%s1142_s21 + $0x40] sm:$0xff] %v580_v9  ;;  %v452_v12 = vpop.f32.mrf.mxu1 }
 0x119   : > { %v453_v13 = vadd.f32 %v452_v12, %v388_v11 }
 0x11b   : > { %v517_v14 = vpop.f32.mrf.mxu2 }
 0x11c   : > { %v518_v15 = vadd.f32 %v517_v14, %v453_v13  ;;  %v582_v16 = vpop.f32.mrf.mxu3 }
 0x11e   : > { %v583_v17 = vadd.f32 %v582_v16, %v518_v15  ;;  %v390_v18 = vpop.f32.mrf.mxu0 }
 0x11f   : > { %v391_v19 = vadd.f32 %v1137_v0, %v390_v18 }
 0x120   : > { %612 = vst [vmem:[%s1142_s21 + $0x48] sm:$0xff] %v583_v17  ;;  %v455_v20 = vpop.f32.mrf.mxu1 }
 0x121   : > { %v456_v21 = vadd.f32 %v455_v20, %v391_v19 }
 0x123   : > { %v520_v22 = vpop.f32.mrf.mxu2 }
 0x124   : > { %v521_v23 = vadd.f32 %v520_v22, %v456_v21  ;;  %v585_v24 = vpop.f32.mrf.mxu3 }
 0x126   : > { %v586_v25 = vadd.f32 %v585_v24, %v521_v23  ;;  %v393_v26 = vpop.f32.mrf.mxu0 }
 0x127   : > { %v394_v27 = vadd.f32 %v1137_v0, %v393_v26 }
 0x128   : > { %613 = vst [vmem:[%s1142_s21 + $0x50] sm:$0xff] %v586_v25  ;;  %v458_v28 = vpop.f32.mrf.mxu1 }
 0x129   : > { %v459_v29 = vadd.f32 %v458_v28, %v394_v27 }
 0x12b   : > { %v523_v30 = vpop.f32.mrf.mxu2 }
 0x12c   : > { %v524_v31 = vadd.f32 %v523_v30, %v459_v29  ;;  %v588_v32 = vpop.f32.mrf.mxu3 }
 0x12e   : > { %v589_v33 = vadd.f32 %v588_v32, %v524_v31  ;;  %v396_v34 = vpop.f32.mrf.mxu0 }
 0x12f   : > { %v397_v35 = vadd.f32 %v1137_v0, %v396_v34 }
 0x130   : > { %614 = vst [vmem:[%s1142_s21 + $0x58] sm:$0xff] %v589_v33  ;;  %v461_v36 = vpop.f32.mrf.mxu1 }
 0x131   : > { %v462_v37 = vadd.f32 %v461_v36, %v397_v35 }
 0x133   : > { %v526_v38 = vpop.f32.mrf.mxu2 }
 0x134   : > { %v527_v39 = vadd.f32 %v526_v38, %v462_v37  ;;  %v591_v40 = vpop.f32.mrf.mxu3 }
 0x136   : > { %v592_v41 = vadd.f32 %v591_v40, %v527_v39  ;;  %v399_v42 = vpop.f32.mrf.mxu0 }
 0x137   : > { %v400_v43 = vadd.f32 %v1137_v0, %v399_v42 }
 0x138   : > { %615 = vst [vmem:[%s1142_s21 + $0x60] sm:$0xff] %v592_v41  ;;  %v464_v44 = vpop.f32.mrf.mxu1 }
 0x139   : > { %v465_v45 = vadd.f32 %v464_v44, %v400_v43 }
 0x13b   : > { %v529_v46 = vpop.f32.mrf.mxu2 }
 0x13c   : > { %v530_v47 = vadd.f32 %v529_v46, %v465_v45  ;;  %v594_v48 = vpop.f32.mrf.mxu3 }
 0x13e   : > { %v595_v49 = vadd.f32 %v594_v48, %v530_v47  ;;  %v402_v50 = vpop.f32.mrf.mxu0 }
 0x13f   : > { %v403_v51 = vadd.f32 %v1137_v0, %v402_v50 }
 0x140   : > { %616 = vst [vmem:[%s1142_s21 + $0x68] sm:$0xff] %v595_v49  ;;  %v467_v52 = vpop.f32.mrf.mxu1 }
 0x141   : > { %v468_v53 = vadd.f32 %v467_v52, %v403_v51 }
 0x143   : > { %v532_v54 = vpop.f32.mrf.mxu2 }
 0x144   : > { %v533_v55 = vadd.f32 %v532_v54, %v468_v53  ;;  %v597_v56 = vpop.f32.mrf.mxu3 }
 0x146   : > { %v598_v57 = vadd.f32 %v597_v56, %v533_v55  ;;  %v405_v58 = vpop.f32.mrf.mxu0 }
 0x147   : > { %v406_v59 = vadd.f32 %v1137_v0, %v405_v58 }
 0x148   : > { %617 = vst [vmem:[%s1142_s21 + $0x70] sm:$0xff] %v598_v57  ;;  %v470_v60 = vpop.f32.mrf.mxu1 }
 0x149   : > { %v471_v61 = vadd.f32 %v470_v60, %v406_v59 }
 0x14b   : > { %v535_v62 = vpop.f32.mrf.mxu2 }
 0x14c   : > { %v536_v63 = vadd.f32 %v535_v62, %v471_v61  ;;  %v600_v1 = vpop.f32.mrf.mxu3 }
 0x14e   : > { %v601_v2 = vadd.f32 %v600_v1, %v536_v63 }
 0x150   : > { %618 = vst [vmem:[%s1142_s21 + $0x78] sm:$0xff] %v601_v2 }
 0x151   : > { %889 = shalt.err (!%p886_p10)
}
 0x152   : > { %s939_s10 = smov 128   ;;  %s940_s18 = smov 8  }
 0x153   : > { %744 = dma.vmem_to_hbm [thread:$0]  (%p1028_p7), %s633_s29, 2048, %s635_s30, %s620_s16, %s939_s10, %s939_s10, %s940_s18  }
 0x154 PF: > { %s649_s23 = sand.u32 1, %s920_s12   ;;  %p1217_p12 = scmp.ge.s32.totalorder %s932_s15, 2 }
 0x155   : > { %s650_s17 = scalar_lea.sflag [#allocation4], %s649_s23 }
 0x156   : > { %p755_p13 = pnand %p1217_p12, %p996_p6 }
 0x158   : > { %p756_p0 = pneg %p755_p13 }
 0x15a   : > { %915 = dma.done.wait (%p756_p0), %s650_s17, 2048  }
 0x15b   : > { %917 = vsyncadd (%p756_p0), %s650_s17, 4294965248  ;;  %p17_p3 = scmp.ge.s32.totalorder %s1014_s26, 4   ;;  %s1218_s12 = smov %s924_s13 }
 0x15c   : > { %s1219_s13 = smov %s928_s14  ;;  %s1220_s14 = smov %s1024_s4 }
 0x15d   : > { %s1221_s15 = smov %s1014_s26  ;;  %19 = sbr.rel (!%p17_p3) target bundleno = 6 (0x6), region = 81 }
 0x162   :  { %656 = vsyncpa [#allocation3], 1 }
 0x163   :  { %658 = vsyncpa [#allocation3 + $0x1], 1 }
 0x164   :  { %659 = vsyncpa [#allocation6], 1 }
 0x165   :  { %660 = vsyncpa [#allocation4], 1 }
 0x166   :  { %662 = vsyncpa [#allocation4 + $0x1], 1 }

</bundles_post_ra>
